<compile_context>
chip_gen: v7x
topology: tpu7x:2x2x1
jax: 0.10.0
libtpu: 0.0.40
codegen_flags: <defaults>
</compile_context>

<pallas_src>
import jax
import jax.numpy as jnp
from jax.experimental import pallas as pl
from jax.experimental.pallas import tpu as pltpu

IN_DIM = 15
OUT_DIM = 1
N_ADV = 3            # discriminator output width
HEAD_W = 128         # one lane-dense block: [adv(3) | out1 | out2 | zero pad]
MAX_TILE_N = 8192    # upper bound on rows per grid step


def _round_up(x, m):
    return (x + m - 1) // m * m


def _mtl_kernel(x_ref, wext_ref, bext_ref, whead_ref, bhead_ref,
                acts_ref, head_ref):
    """One batch tile.

    acts columns (EXT_PAD = round_up(3H, 128)):
        [0:H) a_shared, [H:2H) a_private_1, [2H:3H) a_private_2, rest zero.
    head columns (HEAD_W = 128):
        [0:3) adversarial_out (grad-reversal == identity fwd),
        [3]   out1 = sigmoid(fc1(concat(a_shared, a_private_1))),
        [4]   out2 = sigmoid(fc2(concat(a_shared, a_private_2))),
        rest zero padding.
    """
    x = x_ref[...]

    # Fused extractors: one MXU pass + one tanh over all activation columns.
    # Padding columns have zero weights/bias -> tanh(0) == 0.
    a_full = jnp.tanh(
        jnp.dot(x, wext_ref[...], preferred_element_type=jnp.float32)
        + bext_ref[...]
    )

    # Fused heads: single (EXT_PAD, 128) matmul producing [adv | out1 | out2].
    head = (
        jnp.dot(a_full.astype(whead_ref.dtype), whead_ref[...],
                preferred_element_type=jnp.float32)
        + bhead_ref[...]
    )

    # sigmoid only on the two logit columns (adv stays raw logits);
    # the mask is only 128 lanes wide.
    col = jax.lax.broadcasted_iota(jnp.int32, head.shape, 1)
    is_logit = (col == N_ADV) | (col == N_ADV + OUT_DIM)
    head = jnp.where(is_logit, jax.nn.sigmoid(head), head)

    acts_ref[...] = a_full.astype(acts_ref.dtype)
    head_ref[...] = head.astype(head_ref.dtype)


def _pack_params(params, matmul_dtype):
    """Fused extractor / head weights from the natural per-layer params."""
    h = params["ws"].shape[1]
    ext_pad = _round_up(3 * h, 128)

    w_ext = jnp.zeros((IN_DIM, ext_pad), jnp.float32)
    w_ext = w_ext.at[:, 0:h].set(params["ws"])
    w_ext = w_ext.at[:, h:2 * h].set(params["wp1"])
    w_ext = w_ext.at[:, 2 * h:3 * h].set(params["wp2"])

    b_ext = jnp.zeros((1, ext_pad), jnp.float32)
    b_ext = b_ext.at[:, 0:h].set(params["bs"])
    b_ext = b_ext.at[:, h:2 * h].set(params["bp1"])
    b_ext = b_ext.at[:, 2 * h:3 * h].set(params["bp2"])

    w_head = jnp.zeros((ext_pad, HEAD_W), jnp.float32)
    # discriminator acts on a_shared only
    w_head = w_head.at[0:h, 0:N_ADV].set(params["wd"])
    # fc1 acts on concat(a_shared, a_private_1)
    w_head = w_head.at[0:h, N_ADV:N_ADV + 1].set(params["w1"][0:h])
    w_head = w_head.at[h:2 * h, N_ADV:N_ADV + 1].set(params["w1"][h:2 * h])
    # fc2 acts on concat(a_shared, a_private_2)
    w_head = w_head.at[0:h, N_ADV + 1:N_ADV + 2].set(params["w2"][0:h])
    w_head = w_head.at[2 * h:3 * h, N_ADV + 1:N_ADV + 2].set(params["w2"][h:2 * h])

    b_head = jnp.zeros((1, HEAD_W), jnp.float32)
    b_head = b_head.at[:, 0:N_ADV].set(params["bd"])
    b_head = b_head.at[:, N_ADV:N_ADV + 1].set(params["b1"])
    b_head = b_head.at[:, N_ADV + 1:N_ADV + 2].set(params["b2"])

    # Only matmul operands are cast; biases stay f32 so all elementwise math
    # remains f32 (v5e has no bf16 VPU/EUP; the MXU takes bf16 on all gens).
    return (w_ext.astype(matmul_dtype), b_ext,
            w_head.astype(matmul_dtype), b_head)


def _vmem_budget_bytes():
    """Conservative per-generation VMEM budget for the pipeline."""
    try:
        cap = int(pltpu.get_tpu_info().vmem_capacity_bytes)
    except Exception:
        cap = 128 * 1024 * 1024
    # half of physical, capped: ~48 MiB on v5e/v6e (128 MiB), ~32 MiB on v7x.
    return min(cap // 2, 48 * 1024 * 1024)


def _auto_tile(n, tile_n, ext_pad, mm_bytes, out_bytes, budget):
    """Largest multiple-of-8 row tile that fits the VMEM budget."""
    # double-buffered x ((tile,15) pads to 128 lanes) + double-buffered outputs
    # + f32 intermediates/temporaries for a_full / head.
    per_row = (2 * 128 * mm_bytes
               + 2 * (ext_pad + HEAD_W) * out_bytes
               + 2 * (ext_pad + HEAD_W) * 4)
    weight_bytes = ((16 * ext_pad + ext_pad * HEAD_W) * mm_bytes
                    + (ext_pad + HEAD_W) * 4)
    usable = budget - weight_bytes - (2 << 20)   # 2 MiB compiler slack
    tile = max(8, usable // per_row)
    if tile_n is not None:
        tile = min(tile, int(tile_n))
    tile = min(tile, MAX_TILE_N, _round_up(n, 8))
    return max(8, (tile // 8) * 8)


def adversarial_mtl_forward(x, params, *, tile_n=None,
                            matmul_dtype=jnp.bfloat16,
                            out_dtype=jnp.float32):
    """x: any shape reshapeable to (-1, 15).

    Returns (out1, out2, adversarial_out, (a_shared, a_private_1, a_private_2)).
    matmul_dtype=bf16 (default) halves the x/weight HBM reads on every TPU
    generation (tanh activations are also cast to bf16 before the head matmul,
    so expect ~1e-2 deviation from an f32 reference).  Pass
    matmul_dtype=jnp.float32 for bit-tight numerics.  out_dtype=bf16 halves
    the dominant output write stream (recommended on v6e/v7x).
    """
    h = params["ws"].shape[1]
    ext_pad = _round_up(3 * h, 128)
    mm_bytes = jnp.dtype(matmul_dtype).itemsize
    out_bytes = jnp.dtype(out_dtype).itemsize

    x2d = x.reshape(-1, IN_DIM).astype(jnp.float32)
    n = x2d.shape[0]

    budget = _vmem_budget_bytes()
    tile = _auto_tile(n, tile_n, ext_pad, mm_bytes, out_bytes, budget)
    n_pad = _round_up(n, tile)
    if n_pad != n:
        x2d = jnp.pad(x2d, ((0, n_pad - n), (0, 0)))

    x_in = x2d.astype(matmul_dtype)
    w_ext, b_ext, w_head, b_head = _pack_params(params, matmul_dtype)

    cost = pl.CostEstimate(
        flops=2 * n_pad * IN_DIM * ext_pad + 2 * n_pad * ext_pad * HEAD_W,
        transcendentals=n_pad * (ext_pad + HEAD_W),
        bytes_accessed=(n_pad * IN_DIM * mm_bytes
                        + n_pad * (ext_pad + HEAD_W) * out_bytes
                        + (IN_DIM * ext_pad + ext_pad * HEAD_W) * mm_bytes
                        + (ext_pad + HEAD_W) * 4),
    )

    def build(single_buffer_weights):
        pinned = {}
        if single_buffer_weights:
            # Pinned blocks never change -> no need for double buffers.
            pinned = dict(pipeline_mode=pl.Buffered(1))
        return pl.pallas_call(
            _mtl_kernel,
            out_shape=(jax.ShapeDtypeStruct((n_pad, ext_pad), out_dtype),
                       jax.ShapeDtypeStruct((n_pad, HEAD_W), out_dtype)),
            grid=(n_pad // tile,),
            in_specs=[
                pl.BlockSpec((tile, IN_DIM), lambda i: (i, 0)),            # x tile
                pl.BlockSpec((IN_DIM, ext_pad), lambda i: (0, 0), **pinned),  # fused extractor W
                pl.BlockSpec((1, ext_pad), lambda i: (0, 0), **pinned),       # fused extractor b
                pl.BlockSpec((ext_pad, HEAD_W), lambda i: (0, 0), **pinned),  # fused head W
                pl.BlockSpec((1, HEAD_W), lambda i: (0, 0), **pinned),        # fused head b
            ],
            out_specs=(pl.BlockSpec((tile, ext_pad), lambda i: (i, 0)),
                       pl.BlockSpec((tile, HEAD_W), lambda i: (i, 0))),
            compiler_params=pltpu.CompilerParams(
                dimension_semantics=("parallel",),
                vmem_limit_bytes=int(budget),
            ),
            cost_estimate=cost,
        )

    try:
        acts, head = build(True)(x_in, w_ext, b_ext, w_head, b_head)
    except Exception:
        # Fallback: installed JAX rejects single-buffered pinned operands.
        acts, head = build(False)(x_in, w_ext, b_ext, w_head, b_head)

    acts = acts[:n]
    head = head[:n]
    a_s = acts[:, 0:h]
    a_p1 = acts[:, h:2 * h]
    a_p2 = acts[:, 2 * h:3 * h]
    adv = head[:, 0:N_ADV]
    out1 = head[:, N_ADV:N_ADV + OUT_DIM]
    out2 = head[:, N_ADV + OUT_DIM:N_ADV + 2 * OUT_DIM]
    return out1, out2, adv, (a_s, a_p1, a_p2)


def init_params(key, hidden_unit):
    """Deterministic init matching the nn.Linear shapes of AdversarialMTL."""
    ks = jax.random.split(key, 12)

    def lin(kw, kb, fan_in, fan_out):
        bound = 1.0 / jnp.sqrt(fan_in)
        w = jax.random.uniform(kw, (fan_in, fan_out), jnp.float32, -bound, bound)
        b = jax.random.uniform(kb, (1, fan_out), jnp.float32, -bound, bound)
        return w, b

    ws, bs = lin(ks[0], ks[1], IN_DIM, hidden_unit)
    wp1, bp1 = lin(ks[2], ks[3], IN_DIM, hidden_unit)
    wp2, bp2 = lin(ks[4], ks[5], IN_DIM, hidden_unit)
    wd, bd = lin(ks[6], ks[7], hidden_unit, N_ADV)
    w1, b1 = lin(ks[8], ks[9], 2 * hidden_unit, OUT_DIM)
    w2, b2 = lin(ks[10], ks[11], 2 * hidden_unit, OUT_DIM)
    return {"ws": ws, "bs": bs, "wp1": wp1, "bp1": bp1, "wp2": wp2, "bp2": bp2,
            "wd": wd, "bd": bd, "w1": w1, "b1": b1, "w2": w2, "b2": b2}


def reference_forward(x, params):
    """Pure-JAX reference matching the PyTorch forward."""
    x2d = x.reshape(-1, IN_DIM).astype(jnp.float32)
    a_s = jnp.tanh(x2d @ params["ws"] + params["bs"])
    a_p1 = jnp.tanh(x2d @ params["wp1"] + params["bp1"])
    a_p2 = jnp.tanh(x2d @ params["wp2"] + params["bp2"])
    adv = a_s @ params["wd"] + params["bd"]   # gradient reversal == identity (fwd)
    out1 = jax.nn.sigmoid(jnp.concatenate([a_s, a_p1], 1) @ params["w1"] + params["b1"])
    out2 = jax.nn.sigmoid(jnp.concatenate([a_s, a_p2], 1) @ params["w2"] + params["b2"])
    return out1, out2, adv, (a_s, a_p1, a_p2)


def _check(got_tuple, want_tuple, atol, rtol):
    got1, got2, gadv, (gs, gp1, gp2) = got_tuple
    want1, want2, wadv, (wss, wp1, wp2) = want_tuple
    for got, want in [(got1, want1), (got2, want2), (gadv, wadv),
                      (gs, wss), (gp1, wp1), (gp2, wp2)]:
        assert got.shape == want.shape, (got.shape, want.shape)
        got = got.astype(jnp.float32)
        err = float(jnp.max(jnp.abs(got - want)))
        assert jnp.allclose(got, want, atol=atol, rtol=rtol), err


# TODO(synk): GradiantReverse's custom backward (gradient scaling by -lambda)
# is a training-time autograd rule and is not part of this forward kernel.

if __name__ == "__main__":
    key = jax.random.PRNGKey(0)
    k_x, k_x2, k_p = jax.random.split(key, 3)

    hidden_unit = 32
    params = init_params(k_p, hidden_unit)

    # Small case: (batch=2, seq=4, 15) -> 8 rows, one grid step, f32 operands.
    x = jax.random.normal(k_x, (2, 4, IN_DIM), dtype=jnp.float32)
    got = adversarial_mtl_forward(x, params, matmul_dtype=jnp.float32)
    jax.block_until_ready(got)
    _check(got, reference_forward(x, params), atol=1e-5, rtol=1e-5)

    # Multi-tile case: 200 rows, tile_n=64 -> 4 grid steps with batch padding.
    x2 = jax.random.normal(k_x2, (25, 8, IN_DIM), dtype=jnp.float32)
    got2 = adversarial_mtl_forward(x2, params, tile_n=64,
                                   matmul_dtype=jnp.float32)
    jax.block_until_ready(got2)
    _check(got2, reference_forward(x2, params), atol=1e-5, rtol=1e-5)

    # Default path (bf16 matmul operands, auto tile): looser tolerance.
    got3 = adversarial_mtl_forward(x2, params)
    jax.block_until_ready(got3)
    _check(got3, reference_forward(x2, params), atol=5e-2, rtol=5e-2)

    print("KERNEL_OK")
</pallas_src>

<mosaic_0001>
module attributes {stable_mosaic.version = 11 : i64} {
  func.func @_mtl_kernel(%arg0: i32, %arg1: memref<8x15xf32, #tpu.memory_space<vmem>>, %arg2: memref<15x128xf32, #tpu.memory_space<vmem>>, %arg3: memref<1x128xf32, #tpu.memory_space<vmem>>, %arg4: memref<128x128xf32, #tpu.memory_space<vmem>>, %arg5: memref<1x128xf32, #tpu.memory_space<vmem>>, %arg6: memref<8x128xf32, #tpu.memory_space<vmem>>, %arg7: memref<8x128xf32, #tpu.memory_space<vmem>>) attributes {dimension_semantics = [#tpu.dimension_semantics<parallel>], iteration_bounds = array<i64: 1>, scalar_prefetch = 0 : i64, scratch_operands = 0 : i64, tpu.core_type = #tpu.core_type<tc>, window_params = [{transform_indices = @transform_0, window_bounds = array<i64: 8, 15>}, {pipeline_mode = #tpu.pipeline_mode<synchronous>, transform_indices = @transform_1, window_bounds = array<i64: 15, 128>}, {pipeline_mode = #tpu.pipeline_mode<synchronous>, transform_indices = @transform_2, window_bounds = array<i64: 1, 128>}, {pipeline_mode = #tpu.pipeline_mode<synchronous>, transform_indices = @transform_3, window_bounds = array<i64: 128, 128>}, {pipeline_mode = #tpu.pipeline_mode<synchronous>, transform_indices = @transform_4, window_bounds = array<i64: 1, 128>}, {transform_indices = @transform_5, window_bounds = array<i64: 8, 128>}, {transform_indices = @transform_6, window_bounds = array<i64: 8, 128>}]} {
    %c0 = arith.constant 0 : index
    %c0_0 = arith.constant 0 : index
    %0 = vector.load %arg1[%c0, %c0_0] : memref<8x15xf32, #tpu.memory_space<vmem>>, vector<8x15xf32>
    %c0_1 = arith.constant 0 : index
    %c0_2 = arith.constant 0 : index
    %1 = vector.load %arg2[%c0_1, %c0_2] : memref<15x128xf32, #tpu.memory_space<vmem>>, vector<15x128xf32>
    %cst = arith.constant dense<0.000000e+00> : vector<8x128xf32>
    %2 = tpu.matmul %0, %1, %cst {dimension_numbers = #tpu.dot_dimension_numbers<[1], [0], [0], [1], [0, 0, 1, 1], [], []>} : vector<8x15xf32>, vector<15x128xf32>, vector<8x128xf32> -> vector<8x128xf32>
    %c0_3 = arith.constant 0 : index
    %c0_4 = arith.constant 0 : index
    %3 = vector.load %arg3[%c0_3, %c0_4] : memref<1x128xf32, #tpu.memory_space<vmem>>, vector<1x128xf32>
    %4 = vector.broadcast %3 : vector<1x128xf32> to vector<8x128xf32>
    %5 = arith.addf %2, %4 : vector<8x128xf32>
    %6 = math.tanh %5 : vector<8x128xf32>
    %c0_5 = arith.constant 0 : index
    %c0_6 = arith.constant 0 : index
    %7 = vector.load %arg4[%c0_5, %c0_6] : memref<128x128xf32, #tpu.memory_space<vmem>>, vector<128x128xf32>
    %cst_7 = arith.constant dense<0.000000e+00> : vector<8x128xf32>
    %8 = tpu.matmul %6, %7, %cst_7 {dimension_numbers = #tpu.dot_dimension_numbers<[1], [0], [0], [1], [0, 0, 1, 1], [], []>} : vector<8x128xf32>, vector<128x128xf32>, vector<8x128xf32> -> vector<8x128xf32>
    %c0_8 = arith.constant 0 : index
    %c0_9 = arith.constant 0 : index
    %9 = vector.load %arg5[%c0_8, %c0_9] : memref<1x128xf32, #tpu.memory_space<vmem>>, vector<1x128xf32>
    %10 = vector.broadcast %9 : vector<1x128xf32> to vector<8x128xf32>
    %11 = arith.addf %8, %10 : vector<8x128xf32>
    %12 = tpu.iota {dimensions = array<i32: 1>} : vector<8x128xi32>
    %c3_i32 = arith.constant 3 : i32
    %13 = vector.broadcast %c3_i32 : i32 to vector<8x128xi32>
    %14 = arith.cmpi eq, %12, %13 : vector<8x128xi32>
    %c4_i32 = arith.constant 4 : i32
    %15 = vector.broadcast %c4_i32 : i32 to vector<8x128xi32>
    %16 = arith.cmpi eq, %12, %15 : vector<8x128xi32>
    %17 = arith.ori %14, %16 : vector<8x128xi1>
    %18 = arith.negf %11 : vector<8x128xf32>
    %19 = math.exp %18 : vector<8x128xf32>
    %cst_10 = arith.constant 1.000000e+00 : f32
    %20 = vector.broadcast %cst_10 : f32 to vector<8x128xf32>
    %21 = arith.addf %20, %19 : vector<8x128xf32>
    %22 = arith.divf %20, %21 : vector<8x128xf32>
    %23 = arith.select %17, %22, %11 : vector<8x128xi1>, vector<8x128xf32>
    %c0_11 = arith.constant 0 : index
    %c0_12 = arith.constant 0 : index
    %24 = vector.load %arg6[%c0_11, %c0_12] : memref<8x128xf32, #tpu.memory_space<vmem>>, vector<8x128xf32>
    tpu.vector_store %arg6[%c0_11, %c0_12], %6 {strides = array<i32>} : memref<8x128xf32, #tpu.memory_space<vmem>>, vector<8x128xf32>,
    %c0_13 = arith.constant 0 : index
    %c0_14 = arith.constant 0 : index
    %25 = vector.load %arg7[%c0_13, %c0_14] : memref<8x128xf32, #tpu.memory_space<vmem>>, vector<8x128xf32>
    tpu.vector_store %arg7[%c0_13, %c0_14], %23 {strides = array<i32>} : memref<8x128xf32, #tpu.memory_space<vmem>>, vector<8x128xf32>,
    return
  }
  func.func @transform_0(%arg0: i32) -> (i32, i32) {
    %c0_i32 = arith.constant 0 : i32
    %c0_i32_0 = arith.constant 0 : i32
    return %arg0, %c0_i32 : i32, i32
  }
  func.func @transform_1(%arg0: i32) -> (i32, i32) {
    %c0_i32 = arith.constant 0 : i32
    %c0_i32_0 = arith.constant 0 : i32
    %c0_i32_1 = arith.constant 0 : i32
    return %c0_i32, %c0_i32_0 : i32, i32
  }
  func.func @transform_2(%arg0: i32) -> (i32, i32) {
    %c0_i32 = arith.constant 0 : i32
    %c0_i32_0 = arith.constant 0 : i32
    %c0_i32_1 = arith.constant 0 : i32
    return %c0_i32, %c0_i32_0 : i32, i32
  }
  func.func @transform_3(%arg0: i32) -> (i32, i32) {
    %c0_i32 = arith.constant 0 : i32
    %c0_i32_0 = arith.constant 0 : i32
    %c0_i32_1 = arith.constant 0 : i32
    return %c0_i32, %c0_i32_0 : i32, i32
  }
  func.func @transform_4(%arg0: i32) -> (i32, i32) {
    %c0_i32 = arith.constant 0 : i32
    %c0_i32_0 = arith.constant 0 : i32
    %c0_i32_1 = arith.constant 0 : i32
    return %c0_i32, %c0_i32_0 : i32, i32
  }
  func.func @transform_5(%arg0: i32) -> (i32, i32) {
    %c0_i32 = arith.constant 0 : i32
    %c0_i32_0 = arith.constant 0 : i32
    return %arg0, %c0_i32 : i32, i32
  }
  func.func @transform_6(%arg0: i32) -> (i32, i32) {
    %c0_i32 = arith.constant 0 : i32
    %c0_i32_0 = arith.constant 0 : i32
    return %arg0, %c0_i32 : i32, i32
  }
}

module attributes {stable_mosaic.version = 11 : i64} {
  func.func @_mtl_kernel(%arg0: i32, %arg1: memref<8x15xf32, #tpu.memory_space<vmem>>, %arg2: memref<15x128xf32, #tpu.memory_space<vmem>>, %arg3: memref<1x128xf32, #tpu.memory_space<vmem>>, %arg4: memref<128x128xf32, #tpu.memory_space<vmem>>, %arg5: memref<1x128xf32, #tpu.memory_space<vmem>>, %arg6: memref<8x128xf32, #tpu.memory_space<vmem>>, %arg7: memref<8x128xf32, #tpu.memory_space<vmem>>) attributes {dimension_semantics = [#tpu.dimension_semantics<parallel>], iteration_bounds = array<i64: 1>, scalar_prefetch = 0 : i64, scratch_operands = 0 : i64, tpu.core_type = #tpu.core_type<tc>, window_params = [{transform_indices = @transform_0, window_bounds = array<i64: 8, 15>}, {pipeline_mode = #tpu.pipeline_mode<synchronous>, transform_indices = @transform_1, window_bounds = array<i64: 15, 128>}, {pipeline_mode = #tpu.pipeline_mode<synchronous>, transform_indices = @transform_2, window_bounds = array<i64: 1, 128>}, {pipeline_mode = #tpu.pipeline_mode<synchronous>, transform_indices = @transform_3, window_bounds = array<i64: 128, 128>}, {pipeline_mode = #tpu.pipeline_mode<synchronous>, transform_indices = @transform_4, window_bounds = array<i64: 1, 128>}, {transform_indices = @transform_5, window_bounds = array<i64: 8, 128>}, {transform_indices = @transform_6, window_bounds = array<i64: 8, 128>}]} {
    %c0 = arith.constant 0 : index
    %c0_0 = arith.constant 0 : index
    %0 = vector.load %arg1[%c0, %c0_0] : memref<8x15xf32, #tpu.memory_space<vmem>>, vector<8x15xf32>
    %c0_1 = arith.constant 0 : index
    %c0_2 = arith.constant 0 : index
    %1 = vector.load %arg2[%c0_1, %c0_2] : memref<15x128xf32, #tpu.memory_space<vmem>>, vector<15x128xf32>
    %cst = arith.constant dense<0.000000e+00> : vector<8x128xf32>
    %2 = tpu.matmul %0, %1, %cst {dimension_numbers = #tpu.dot_dimension_numbers<[1], [0], [0], [1], [0, 0, 1, 1], [], []>} : vector<8x15xf32>, vector<15x128xf32>, vector<8x128xf32> -> vector<8x128xf32>
    %c0_3 = arith.constant 0 : index
    %c0_4 = arith.constant 0 : index
    %3 = vector.load %arg3[%c0_3, %c0_4] : memref<1x128xf32, #tpu.memory_space<vmem>>, vector<1x128xf32>
    %4 = vector.broadcast %3 : vector<1x128xf32> to vector<8x128xf32>
    %5 = arith.addf %2, %4 : vector<8x128xf32>
    %6 = math.tanh %5 : vector<8x128xf32>
    %c0_5 = arith.constant 0 : index
    %c0_6 = arith.constant 0 : index
    %7 = vector.load %arg4[%c0_5, %c0_6] : memref<128x128xf32, #tpu.memory_space<vmem>>, vector<128x128xf32>
    %cst_7 = arith.constant dense<0.000000e+00> : vector<8x128xf32>
    %8 = tpu.matmul %6, %7, %cst_7 {dimension_numbers = #tpu.dot_dimension_numbers<[1], [0], [0], [1], [0, 0, 1, 1], [], []>} : vector<8x128xf32>, vector<128x128xf32>, vector<8x128xf32> -> vector<8x128xf32>
    %c0_8 = arith.constant 0 : index
    %c0_9 = arith.constant 0 : index
    %9 = vector.load %arg5[%c0_8, %c0_9] : memref<1x128xf32, #tpu.memory_space<vmem>>, vector<1x128xf32>
    %10 = vector.broadcast %9 : vector<1x128xf32> to vector<8x128xf32>
    %11 = arith.addf %8, %10 : vector<8x128xf32>
    %12 = tpu.iota {dimensions = array<i32: 1>} : vector<8x128xi32>
    %c3_i32 = arith.constant 3 : i32
    %13 = vector.broadcast %c3_i32 : i32 to vector<8x128xi32>
    %14 = arith.cmpi eq, %12, %13 : vector<8x128xi32>
    %c4_i32 = arith.constant 4 : i32
    %15 = vector.broadcast %c4_i32 : i32 to vector<8x128xi32>
    %16 = arith.cmpi eq, %12, %15 : vector<8x128xi32>
    %17 = arith.ori %14, %16 : vector<8x128xi1>
    %18 = arith.negf %11 : vector<8x128xf32>
    %19 = math.exp %18 : vector<8x128xf32>
    %cst_10 = arith.constant 1.000000e+00 : f32
    %20 = vector.broadcast %cst_10 : f32 to vector<8x128xf32>
    %21 = arith.addf %20, %19 : vector<8x128xf32>
    %22 = arith.divf %20, %21 : vector<8x128xf32>
    %23 = arith.select %17, %22, %11 : vector<8x128xi1>, vector<8x128xf32>
    %c0_11 = arith.constant 0 : index
    %c0_12 = arith.constant 0 : index
    %24 = vector.load %arg6[%c0_11, %c0_12] : memref<8x128xf32, #tpu.memory_space<vmem>>, vector<8x128xf32>
    tpu.vector_store %arg6[%c0_11, %c0_12], %6 {strides = array<i32>} : memref<8x128xf32, #tpu.memory_space<vmem>>, vector<8x128xf32>,
    %c0_13 = arith.constant 0 : index
    %c0_14 = arith.constant 0 : index
    %25 = vector.load %arg7[%c0_13, %c0_14] : memref<8x128xf32, #tpu.memory_space<vmem>>, vector<8x128xf32>
    tpu.vector_store %arg7[%c0_13, %c0_14], %23 {strides = array<i32>} : memref<8x128xf32, #tpu.memory_space<vmem>>, vector<8x128xf32>,
    return
  }
  func.func @transform_0(%arg0: i32) -> (i32, i32) {
    %c0_i32 = arith.constant 0 : i32
    %c0_i32_0 = arith.constant 0 : i32
    return %arg0, %c0_i32 : i32, i32
  }
  func.func @transform_1(%arg0: i32) -> (i32, i32) {
    %c0_i32 = arith.constant 0 : i32
    %c0_i32_0 = arith.constant 0 : i32
    %c0_i32_1 = arith.constant 0 : i32
    return %c0_i32, %c0_i32_0 : i32, i32
  }
  func.func @transform_2(%arg0: i32) -> (i32, i32) {
    %c0_i32 = arith.constant 0 : i32
    %c0_i32_0 = arith.constant 0 : i32
    %c0_i32_1 = arith.constant 0 : i32
    return %c0_i32, %c0_i32_0 : i32, i32
  }
  func.func @transform_3(%arg0: i32) -> (i32, i32) {
    %c0_i32 = arith.constant 0 : i32
    %c0_i32_0 = arith.constant 0 : i32
    %c0_i32_1 = arith.constant 0 : i32
    return %c0_i32, %c0_i32_0 : i32, i32
  }
  func.func @transform_4(%arg0: i32) -> (i32, i32) {
    %c0_i32 = arith.constant 0 : i32
    %c0_i32_0 = arith.constant 0 : i32
    %c0_i32_1 = arith.constant 0 : i32
    return %c0_i32, %c0_i32_0 : i32, i32
  }
  func.func @transform_5(%arg0: i32) -> (i32, i32) {
    %c0_i32 = arith.constant 0 : i32
    %c0_i32_0 = arith.constant 0 : i32
    return %arg0, %c0_i32 : i32, i32
  }
  func.func @transform_6(%arg0: i32) -> (i32, i32) {
    %c0_i32 = arith.constant 0 : i32
    %c0_i32_0 = arith.constant 0 : i32
    return %arg0, %c0_i32 : i32, i32
  }
}

</mosaic_0001>

<bundles_post_ra>
// kernel: tpu_custom_call.1
= control target key start
LH: loop header
LB: loop body
LE: loop exit
PB: predicated region body
PF: predicated region fallthrough
CT: control target
= control target key end

     0   :  { %12 = vsyncpa [#allocation3], 0  ;;  %s637_s0 = inlined_call_operand.hbm [shape: f32[8,15], index: 0, kind: input, shape index: {}]   ;;  %s638_s1 = inlined_call_operand.hbm [shape: f32[15,128], index: 1, kind: input, shape index: {}]   ;;  %s639_s2 = inlined_call_operand.vmem [shape: f32[1,128], index: 2, kind: input, shape index: {}]   ;;  %s640_s3 = inlined_call_operand.hbm [shape: f32[128,128], index: 3, kind: input, shape index: {}]   ;;  %s641_s4 = inlined_call_operand.vmem [shape: f32[1,128], index: 4, kind: input, shape index: {}]   ;;  %s642_s5 = inlined_call_operand.hbm [shape: f32[8,128], index: 5, kind: output, shape index: {0}]   ;;  %s643_s6 = inlined_call_operand.hbm [shape: f32[8,128], index: 6, kind: output, shape index: {1}]  }
   0x1   :  { %13 = vsyncpa [#allocation6], 0 }
   0x2   :  { %14 = vsyncpa [#allocation4], 0 }
   0x3   :  { %15 = vsyncpa [#allocation10], 0  ;;  %s519_s21 = smov [#allocation5]   ;;  %s401_s25 = scalar_lea.hbm %s638_s1, 256 }
   0x4   :  { %s31_s22 = sshll.u32 %s519_s21, 4  ;;  %p402_p0 = scmp.ne.s32.totalorder %s638_s1, %s401_s25  ;;  %s32_s22 = int_to_ptr.vmem [resolvable:$true] %s31_s22 }
   0x5   :  { %p405_p1 = scmp.lt.u32.totalorder %s401_s25, %s638_s1 }
   0x7   :  { %p407_p2 = pnand %p405_p1, %p402_p0 }
   0x9   :  { %410 = shalt.err (!%p407_p2)
}
   0xa   :  { %s411_s30 = scalar_lea.vmem %s32_s22, 256  ;;  %p416_p4 = scmp.lt.s32.totalorder %s32_s22, %s32_s22 }
   0xb   :  { %p412_p3 = scmp.ne.s32.totalorder %s32_s22, %s411_s30  ;;  %p417_p5 = scmp.lt.s32.totalorder %s411_s30, %s411_s30 }
   0xd   :  { %p418_p6 = por %p417_p5, %p416_p4 }
   0xf   :  { %p419_p7 = pnand %p418_p6, %p412_p3 }
  0x11   :  { %422 = shalt.err (!%p419_p7)
}
  0x12   :  { %s520_s7 = smov 128   ;;  %s521_s8 = smov 8  }
  0x13   :  { %37 = dma.hbm_to_vmem [thread:$0]  %s638_s1, 256, %s32_s22, [#allocation6], %s520_s7, %s520_s7, %s521_s8  }
  0x14   :  { %s522_s11 = smov [#allocation2]   ;;  %s523_s13 = smov [#allocation7]  }
  0x15   :  { %s22_s12 = sshll.u32 %s522_s11, 4  ;;  %s45_s14 = sshll.u32 %s523_s13, 4  ;;  %s23_s12 = int_to_ptr.vmem [resolvable:$true] %s22_s12  ;;  %s46_s14 = int_to_ptr.vmem [resolvable:$true] %s45_s14 }
  0x16   :  { %s423_s17 = scalar_lea.hbm %s637_s0, 128 }
  0x17   :  { %p424_p8 = scmp.ne.s32.totalorder %s637_s0, %s423_s17  ;;  %p427_p9 = scmp.lt.u32.totalorder %s423_s17, %s637_s0 }
  0x19   :  { %p429_p10 = pnand %p427_p9, %p424_p8 }
  0x1b   :  { %432 = shalt.err (!%p429_p10)
}
  0x1c   :  { %s433_s1 = scalar_lea.vmem %s23_s12, 128  ;;  %p438_p12 = scmp.lt.s32.totalorder %s23_s12, %s23_s12 }
  0x1d   :  { %p434_p11 = scmp.ne.s32.totalorder %s23_s12, %s433_s1  ;;  %p439_p13 = scmp.lt.s32.totalorder %s433_s1, %s433_s1 }
  0x1f   :  { %p440_p0 = por %p439_p13, %p438_p12 }
  0x21   :  { %p441_p1 = pnand %p440_p0, %p434_p11 }
  0x23   :  { %444 = shalt.err (!%p441_p1)
}
  0x24   :  { %25 = dma.hbm_to_vmem [thread:$0]  %s637_s0, 128, %s23_s12, [#allocation3]  }
  0x25   :  { %s445_s26 = scalar_lea.hbm %s640_s3, 2048 }
  0x26   :  { %p446_p2 = scmp.ne.s32.totalorder %s640_s3, %s445_s26  ;;  %p449_p3 = scmp.lt.u32.totalorder %s445_s26, %s640_s3 }
  0x28   :  { %p451_p4 = pnand %p449_p3, %p446_p2 }
  0x2a   :  { %454 = shalt.err (!%p451_p4)
}
  0x2b   :  { %s455_s9 = scalar_lea.vmem %s46_s14, 2048  ;;  %p460_p6 = scmp.lt.s32.totalorder %s46_s14, %s46_s14 }
  0x2c   :  { %p456_p5 = scmp.ne.s32.totalorder %s46_s14, %s455_s9  ;;  %p461_p7 = scmp.lt.s32.totalorder %s455_s9, %s455_s9 }
  0x2e   :  { %p462_p8 = por %p461_p7, %p460_p6 }
  0x30   :  { %p463_p9 = pnand %p462_p8, %p456_p5 }
  0x32   :  { %466 = shalt.err (!%p463_p9)
}
  0x33   :  { %51 = dma.hbm_to_vmem [thread:$0]  %s640_s3, 2048, %s46_s14, [#allocation6], %s520_s7, %s520_s7, %s521_s8  }
  0x34   :  { %511 = dma.done.wait [#allocation3], 128  }
  0x35   :  { %512 = vsyncadd [#allocation3], 4294967168 }
  0x36   :  { %513 = dma.done.wait [#allocation6], 2304  }
  0x37   :  { %514 = vsyncadd [#allocation6], 4294964992  ;;  %v524_v0 = vmov 0.0|0.0   ;;  %vm525_vm0 = vmmov 0   ;;  %v526_v1 = vmov 0.0   ;;  %vm77_vm1 = vcmask 1046528  }
  0x38   :  { %356 = vmatprep.subr.bf16.mxu0 %v524_v0  ;;  %360 = vmatprep.subr.bf16.mxu1 %v524_v0  ;;  %v64_v2 = vld [vmem:[#allocation5] sm:$0xff]  ;;  %v65_v3 = vld [vmem:[#allocation5 + $0x8] sm:$0x7f]  ;;  %vm527_vm2 = vmmov 1   ;;  %v152_v5 = vld [vmem:[#allocation7] sm:$0xff]  ;;  %vm73_vm4 = vcmask 121856  }
  0x39   :  { %318 = vmatprep.mubr.msk.f32.mxu0 %vm525_vm0, %v526_v1  ;;  %353 = vmatprep.mubr.msk.f32.mxu1 %vm525_vm0, %v526_v1  ;;  %vm358_vm3 = vmpackc.low %vm77_vm1, %vm527_vm2  ;;  %v357_v4 = vpack.c.bf16 %v65_v3, %v64_v2  ;;  %v153_v6 = vld [vmem:[#allocation7 + $0x8] sm:$0xff]  ;;  %v154_v7 = vld [vmem:[#allocation7 + $0x10] sm:$0xff]  ;;  %s528_s8 = smov [#allocation8]  }
  0x3a   :  { %v361_v8 = vpack.c.bf16 %v153_v6, %v152_v5  ;;  %v155_v9 = vld [vmem:[#allocation7 + $0x18] sm:$0xff]  ;;  %v63_v10 = vld [vmem:[#allocation2] sm:$0xff]  ;;  %v156_v12 = vld [vmem:[#allocation7 + $0x20] sm:$0xff]  ;;  %s265_s11 = sshll.u32 %s528_s8, 4  ;;  %s266_s11 = int_to_ptr.vmem [resolvable:$true] %s265_s11 }
  0x3b   :  { %359 = vmatpush3.bf16.msk.msra.mxu0 %vm358_vm3, %v357_v4  ;;  %v364_v11 = vpack.c.bf16 %v155_v9, %v154_v7  ;;  %v157_v13 = vld [vmem:[#allocation7 + $0x28] sm:$0xff]  ;;  %v158_v15 = vld [vmem:[#allocation7 + $0x30] sm:$0xff]  ;;  %v159_v16 = vld [vmem:[#allocation7 + $0x38] sm:$0xff]  ;;  %s467_s12 = scalar_lea.vmem %s266_s11, 128  ;;  %p472_p11 = scmp.lt.s32.totalorder %s266_s11, %s266_s11 }
  0x3c   :  { %362 = vmatpush3.bf16.msra.mxu1 %v361_v8  ;;  %v367_v14 = vpack.c.bf16 %v157_v13, %v156_v12  ;;  %v370_v17 = vpack.c.bf16 %v159_v16, %v158_v15  ;;  %v160_v18 = vld [vmem:[#allocation7 + $0x40] sm:$0xff]  ;;  %v161_v19 = vld [vmem:[#allocation7 + $0x48] sm:$0xff]  ;;  %v162_v21 = vld [vmem:[#allocation7 + $0x50] sm:$0xff]  ;;  %p468_p10 = scmp.ne.s32.totalorder %s266_s11, %s467_s12  ;;  %p473_p12 = scmp.lt.s32.totalorder %s467_s12, %s467_s12 }
  0x3d   :  { %363 = vmatprep.subr.bf16.mxu1 %v524_v0  ;;  %v373_v20 = vpack.c.bf16 %v161_v19, %v160_v18  ;;  %v163_v22 = vld [vmem:[#allocation7 + $0x58] sm:$0xff]  ;;  %v164_v24 = vld [vmem:[#allocation7 + $0x60] sm:$0xff]  ;;  %v165_v25 = vld [vmem:[#allocation7 + $0x68] sm:$0xff] }
  0x3e   :  { %319 = vmatmul.mubr.msk.f32.vlgmr.msra.gmra.mrb[0].mxu0 %vm73_vm4, %v63_v10  ;;  %v376_v23 = vpack.c.bf16 %v163_v22, %v162_v21  ;;  %v379_v26 = vpack.c.bf16 %v165_v25, %v164_v24  ;;  %v166_v27 = vld [vmem:[#allocation7 + $0x70] sm:$0xff]  ;;  %v167_v28 = vld [vmem:[#allocation7 + $0x78] sm:$0xff]  ;;  %v289_v30 = vld [vmem:[%s639_s2] ss:$0 sm:$0xff]  ;;  %p474_p13 = por %p473_p12, %p472_p11 }
  0x3f   :  { %v382_v29 = vpack.c.bf16 %v167_v28, %v166_v27 }
  0x40   :  { %365 = vmatpush3.bf16.msra.mxu1 %v364_v11  ;;  %p475_p0 = pnand %p474_p13, %p468_p10 }
  0x41   :  { %366 = vmatprep.subr.bf16.mxu1 %v524_v0 }
  0x44   :  { %368 = vmatpush3.bf16.msra.mxu1 %v367_v14 }
  0x45   :  { %369 = vmatprep.subr.bf16.mxu1 %v524_v0 }
  0x48   :  { %371 = vmatpush3.bf16.msra.mxu1 %v370_v17 }
  0x49   :  { %372 = vmatprep.subr.bf16.mxu1 %v524_v0 }
  0x4c   :  { %374 = vmatpush3.bf16.msra.mxu1 %v373_v20 }
  0x4d   :  { %375 = vmatprep.subr.bf16.mxu1 %v524_v0 }
  0x50   :  { %377 = vmatpush3.bf16.msra.mxu1 %v376_v23 }
  0x51   :  { %378 = vmatprep.subr.bf16.mxu1 %v524_v0 }
  0x54   :  { %380 = vmatpush3.bf16.msra.mxu1 %v379_v26 }
  0x55   :  { %381 = vmatprep.subr.bf16.mxu1 %v524_v0 }
  0x58   :  { %383 = vmatpush3.bf16.msra.mxu1 %v382_v29 }
 0x111   :  { %v147_v31 = vpop.f32.mrb[0].mxu0 }
 0x112   :  { %v148_v32 = vadd.f32 %v289_v30, %v147_v31  ;;  %v320_v33 = vpop.f32.mrb[1].mxu0 }
 0x114   :  { %395 = vtanh.f32 %v148_v32 }
 0x11e   :  { %v396_v34 = vpop.eup %395 }
 0x11f   :  { %257 = vst [vmem:[#allocation8] sm:$0xff] %v396_v34  ;;  %354 = vmatmul.mubr.f32.vlgmr.msra.gmra.mrb[0].mxu1 %v396_v34 }
 0x120   :  { %478 = shalt.err (!%p475_p0)
}
 0x121   :  { %s479_s2 = scalar_lea.hbm %s642_s5, 128 }
 0x122   :  { %p480_p1 = scmp.ne.s32.totalorder %s642_s5, %s479_s2  ;;  %p483_p2 = scmp.lt.u32.totalorder %s479_s2, %s642_s5 }
 0x124   :  { %p485_p3 = pnand %p483_p2, %p480_p1 }
 0x126   :  { %488 = shalt.err (!%p485_p3)
}
 0x127   :  { %268 = dma.vmem_to_hbm [thread:$0]  %s266_s11, 128, %s642_s5, [#allocation4]   ;;  %v292_v35 = vld [vmem:[%s641_s4] ss:$0 sm:$0xff]  ;;  %v245_v41 = vlaneseq }
 0x128   :  { %s529_s22 = smov [#allocation9]  }
 0x129   :  { %v246_v43 = vand.u32 127, %v245_v41  ;;  %s275_s23 = sshll.u32 %s529_s22, 4  ;;  %s276_s23 = int_to_ptr.vmem [resolvable:$true] %s275_s23 }
 0x12a   :  { %s489_s4 = scalar_lea.vmem %s276_s23, 128  ;;  %p494_p5 = scmp.lt.s32.totalorder %s276_s23, %s276_s23 }
 0x12b   :  { %vm247_vm5 = vcmp.eq.s32.totalorder %v246_v43, 3  ;;  %vm248_vm6 = vcmp.eq.s32.totalorder %v246_v43, 4  ;;  %p490_p4 = scmp.ne.s32.totalorder %s276_s23, %s489_s4  ;;  %p495_p6 = scmp.lt.s32.totalorder %s489_s4, %s489_s4 }
 0x12c   :  { %vm249_vm7 = vmor %vm247_vm5, %vm248_vm6 }
 0x12d   :  { %p496_p7 = por %p495_p6, %p494_p5 }
 0x12f   :  { %p497_p8 = pnand %p496_p7, %p490_p4 }
 0x1f2   :  { %v241_v36 = vpop.f32.mrb[0].mxu1 }
 0x1f3   :  { %v242_v37 = vadd.f32 %v292_v35, %v241_v36  ;;  %v355_v38 = vpop.f32.mrb[1].mxu1 }
 0x1f5   :  { %v293_v39 = vmul.f32 -1.442695, %v242_v37 }
 0x1f7   :  { %397 = vpow2.f32 %v293_v39 }
 0x201   :  { %v398_v40 = vpop.eup %397 }
 0x202   :  { %v253_v42 = vadd.f32 1.0, %v398_v40 }
 0x204   :  { %399 = vrcp.f32 %v253_v42 }
 0x20e   :  { %v400_v44 = vpop.eup %399 }
 0x20f   :  { %v256_v45 = vsel %vm249_vm7, %v400_v44, %v242_v37 }
 0x210   :  { %258 = vst [vmem:[#allocation9] sm:$0xff] %v256_v45 }
 0x211   :  { %500 = shalt.err (!%p497_p8)
}
 0x212   :  { %s501_s25 = scalar_lea.hbm %s643_s6, 128 }
 0x213   :  { %p502_p9 = scmp.ne.s32.totalorder %s643_s6, %s501_s25  ;;  %p505_p10 = scmp.lt.u32.totalorder %s501_s25, %s643_s6 }
 0x215   :  { %p507_p11 = pnand %p505_p10, %p502_p9 }
 0x217   :  { %510 = shalt.err (!%p507_p11)
}
 0x218   :  { %278 = dma.vmem_to_hbm [thread:$0]  %s276_s23, 128, %s643_s6, [#allocation10]  }
 0x219   :  { %515 = dma.done.wait [#allocation4], 128  }
 0x21a   :  { %516 = vsyncadd [#allocation4], 4294967168 }
 0x21b   :  { %517 = dma.done.wait [#allocation10], 128  }
 0x21c   :  { %518 = vsyncadd [#allocation10], 4294967168 }
 0x21d   :  { %285 = vsyncpa [#allocation3], 1 }
 0x21e   :  { %286 = vsyncpa [#allocation6], 1 }
 0x21f   :  { %287 = vsyncpa [#allocation4], 1 }
 0x220   :  { %288 = vsyncpa [#allocation10], 1 }

// kernel: tpu_custom_call.1
= control target key start
LH: loop header
LB: loop body
LE: loop exit
PB: predicated region body
PF: predicated region fallthrough
CT: control target
= control target key end

     0   :  { %12 = vsyncpa [#allocation3], 0  ;;  %s637_s0 = inlined_call_operand.hbm [shape: f32[8,15], index: 0, kind: input, shape index: {}]   ;;  %s638_s1 = inlined_call_operand.hbm [shape: f32[15,128], index: 1, kind: input, shape index: {}]   ;;  %s639_s2 = inlined_call_operand.vmem [shape: f32[1,128], index: 2, kind: input, shape index: {}]   ;;  %s640_s3 = inlined_call_operand.hbm [shape: f32[128,128], index: 3, kind: input, shape index: {}]   ;;  %s641_s4 = inlined_call_operand.vmem [shape: f32[1,128], index: 4, kind: input, shape index: {}]   ;;  %s642_s5 = inlined_call_operand.hbm [shape: f32[8,128], index: 5, kind: output, shape index: {0}]   ;;  %s643_s6 = inlined_call_operand.hbm [shape: f32[8,128], index: 6, kind: output, shape index: {1}]  }
   0x1   :  { %13 = vsyncpa [#allocation6], 0 }
   0x2   :  { %14 = vsyncpa [#allocation4], 0 }
   0x3   :  { %15 = vsyncpa [#allocation10], 0  ;;  %s519_s21 = smov [#allocation5]   ;;  %s401_s25 = scalar_lea.hbm %s638_s1, 256 }
   0x4   :  { %s31_s22 = sshll.u32 %s519_s21, 4  ;;  %p402_p0 = scmp.ne.s32.totalorder %s638_s1, %s401_s25  ;;  %s32_s22 = int_to_ptr.vmem [resolvable:$true] %s31_s22 }
   0x5   :  { %p405_p1 = scmp.lt.u32.totalorder %s401_s25, %s638_s1 }
   0x7   :  { %p407_p2 = pnand %p405_p1, %p402_p0 }
   0x9   :  { %410 = shalt.err (!%p407_p2)
}
   0xa   :  { %s411_s30 = scalar_lea.vmem %s32_s22, 256  ;;  %p416_p4 = scmp.lt.s32.totalorder %s32_s22, %s32_s22 }
   0xb   :  { %p412_p3 = scmp.ne.s32.totalorder %s32_s22, %s411_s30  ;;  %p417_p5 = scmp.lt.s32.totalorder %s411_s30, %s411_s30 }
   0xd   :  { %p418_p6 = por %p417_p5, %p416_p4 }
   0xf   :  { %p419_p7 = pnand %p418_p6, %p412_p3 }
  0x11   :  { %422 = shalt.err (!%p419_p7)
}
  0x12   :  { %s520_s7 = smov 128   ;;  %s521_s8 = smov 8  }
  0x13   :  { %37 = dma.hbm_to_vmem [thread:$0]  %s638_s1, 256, %s32_s22, [#allocation6], %s520_s7, %s520_s7, %s521_s8  }
  0x14   :  { %s522_s11 = smov [#allocation2]   ;;  %s523_s13 = smov [#allocation7]  }
  0x15   :  { %s22_s12 = sshll.u32 %s522_s11, 4  ;;  %s45_s14 = sshll.u32 %s523_s13, 4  ;;  %s23_s12 = int_to_ptr.vmem [resolvable:$true] %s22_s12  ;;  %s46_s14 = int_to_ptr.vmem [resolvable:$true] %s45_s14 }
  0x16   :  { %s423_s17 = scalar_lea.hbm %s637_s0, 128 }
  0x17   :  { %p424_p8 = scmp.ne.s32.totalorder %s637_s0, %s423_s17  ;;  %p427_p9 = scmp.lt.u32.totalorder %s423_s17, %s637_s0 }
  0x19   :  { %p429_p10 = pnand %p427_p9, %p424_p8 }
  0x1b   :  { %432 = shalt.err (!%p429_p10)
}
  0x1c   :  { %s433_s1 = scalar_lea.vmem %s23_s12, 128  ;;  %p438_p12 = scmp.lt.s32.totalorder %s23_s12, %s23_s12 }
  0x1d   :  { %p434_p11 = scmp.ne.s32.totalorder %s23_s12, %s433_s1  ;;  %p439_p13 = scmp.lt.s32.totalorder %s433_s1, %s433_s1 }
  0x1f   :  { %p440_p0 = por %p439_p13, %p438_p12 }
  0x21   :  { %p441_p1 = pnand %p440_p0, %p434_p11 }
  0x23   :  { %444 = shalt.err (!%p441_p1)
}
  0x24   :  { %25 = dma.hbm_to_vmem [thread:$0]  %s637_s0, 128, %s23_s12, [#allocation3]  }
  0x25   :  { %s445_s26 = scalar_lea.hbm %s640_s3, 2048 }
  0x26   :  { %p446_p2 = scmp.ne.s32.totalorder %s640_s3, %s445_s26  ;;  %p449_p3 = scmp.lt.u32.totalorder %s445_s26, %s640_s3 }
  0x28   :  { %p451_p4 = pnand %p449_p3, %p446_p2 }
  0x2a   :  { %454 = shalt.err (!%p451_p4)
}
  0x2b   :  { %s455_s9 = scalar_lea.vmem %s46_s14, 2048  ;;  %p460_p6 = scmp.lt.s32.totalorder %s46_s14, %s46_s14 }
  0x2c   :  { %p456_p5 = scmp.ne.s32.totalorder %s46_s14, %s455_s9  ;;  %p461_p7 = scmp.lt.s32.totalorder %s455_s9, %s455_s9 }
  0x2e   :  { %p462_p8 = por %p461_p7, %p460_p6 }
  0x30   :  { %p463_p9 = pnand %p462_p8, %p456_p5 }
  0x32   :  { %466 = shalt.err (!%p463_p9)
}
  0x33   :  { %51 = dma.hbm_to_vmem [thread:$0]  %s640_s3, 2048, %s46_s14, [#allocation6], %s520_s7, %s520_s7, %s521_s8  }
  0x34   :  { %511 = dma.done.wait [#allocation3], 128  }
  0x35   :  { %512 = vsyncadd [#allocation3], 4294967168 }
  0x36   :  { %513 = dma.done.wait [#allocation6], 2304  }
  0x37   :  { %514 = vsyncadd [#allocation6], 4294964992  ;;  %v524_v0 = vmov 0.0|0.0   ;;  %vm525_vm0 = vmmov 0   ;;  %v526_v1 = vmov 0.0   ;;  %vm77_vm1 = vcmask 1046528  }
  0x38   :  { %356 = vmatprep.subr.bf16.mxu0 %v524_v0  ;;  %360 = vmatprep.subr.bf16.mxu1 %v524_v0  ;;  %v64_v2 = vld [vmem:[#allocation5] sm:$0xff]  ;;  %v65_v3 = vld [vmem:[#allocation5 + $0x8] sm:$0x7f]  ;;  %vm527_vm2 = vmmov 1   ;;  %v152_v5 = vld [vmem:[#allocation7] sm:$0xff]  ;;  %vm73_vm4 = vcmask 121856  }
  0x39   :  { %318 = vmatprep.mubr.msk.f32.mxu0 %vm525_vm0, %v526_v1  ;;  %353 = vmatprep.mubr.msk.f32.mxu1 %vm525_vm0, %v526_v1  ;;  %vm358_vm3 = vmpackc.low %vm77_vm1, %vm527_vm2  ;;  %v357_v4 = vpack.c.bf16 %v65_v3, %v64_v2  ;;  %v153_v6 = vld [vmem:[#allocation7 + $0x8] sm:$0xff]  ;;  %v154_v7 = vld [vmem:[#allocation7 + $0x10] sm:$0xff]  ;;  %s528_s8 = smov [#allocation8]  }
  0x3a   :  { %v361_v8 = vpack.c.bf16 %v153_v6, %v152_v5  ;;  %v155_v9 = vld [vmem:[#allocation7 + $0x18] sm:$0xff]  ;;  %v63_v10 = vld [vmem:[#allocation2] sm:$0xff]  ;;  %v156_v12 = vld [vmem:[#allocation7 + $0x20] sm:$0xff]  ;;  %s265_s11 = sshll.u32 %s528_s8, 4  ;;  %s266_s11 = int_to_ptr.vmem [resolvable:$true] %s265_s11 }
  0x3b   :  { %359 = vmatpush3.bf16.msk.msra.mxu0 %vm358_vm3, %v357_v4  ;;  %v364_v11 = vpack.c.bf16 %v155_v9, %v154_v7  ;;  %v157_v13 = vld [vmem:[#allocation7 + $0x28] sm:$0xff]  ;;  %v158_v15 = vld [vmem:[#allocation7 + $0x30] sm:$0xff]  ;;  %v159_v16 = vld [vmem:[#allocation7 + $0x38] sm:$0xff]  ;;  %s467_s12 = scalar_lea.vmem %s266_s11, 128  ;;  %p472_p11 = scmp.lt.s32.totalorder %s266_s11, %s266_s11 }
  0x3c   :  { %362 = vmatpush3.bf16.msra.mxu1 %v361_v8  ;;  %v367_v14 = vpack.c.bf16 %v157_v13, %v156_v12  ;;  %v370_v17 = vpack.c.bf16 %v159_v16, %v158_v15  ;;  %v160_v18 = vld [vmem:[#allocation7 + $0x40] sm:$0xff]  ;;  %v161_v19 = vld [vmem:[#allocation7 + $0x48] sm:$0xff]  ;;  %v162_v21 = vld [vmem:[#allocation7 + $0x50] sm:$0xff]  ;;  %p468_p10 = scmp.ne.s32.totalorder %s266_s11, %s467_s12  ;;  %p473_p12 = scmp.lt.s32.totalorder %s467_s12, %s467_s12 }
  0x3d   :  { %363 = vmatprep.subr.bf16.mxu1 %v524_v0  ;;  %v373_v20 = vpack.c.bf16 %v161_v19, %v160_v18  ;;  %v163_v22 = vld [vmem:[#allocation7 + $0x58] sm:$0xff]  ;;  %v164_v24 = vld [vmem:[#allocation7 + $0x60] sm:$0xff]  ;;  %v165_v25 = vld [vmem:[#allocation7 + $0x68] sm:$0xff] }
  0x3e   :  { %319 = vmatmul.mubr.msk.f32.vlgmr.msra.gmra.mrb[0].mxu0 %vm73_vm4, %v63_v10  ;;  %v376_v23 = vpack.c.bf16 %v163_v22, %v162_v21  ;;  %v379_v26 = vpack.c.bf16 %v165_v25, %v164_v24  ;;  %v166_v27 = vld [vmem:[#allocation7 + $0x70] sm:$0xff]  ;;  %v167_v28 = vld [vmem:[#allocation7 + $0x78] sm:$0xff]  ;;  %v289_v30 = vld [vmem:[%s639_s2] ss:$0 sm:$0xff]  ;;  %p474_p13 = por %p473_p12, %p472_p11 }
  0x3f   :  { %v382_v29 = vpack.c.bf16 %v167_v28, %v166_v27 }
  0x40   :  { %365 = vmatpush3.bf16.msra.mxu1 %v364_v11  ;;  %p475_p0 = pnand %p474_p13, %p468_p10 }
  0x41   :  { %366 = vmatprep.subr.bf16.mxu1 %v524_v0 }
  0x44   :  { %368 = vmatpush3.bf16.msra.mxu1 %v367_v14 }
  0x45   :  { %369 = vmatprep.subr.bf16.mxu1 %v524_v0 }
  0x48   :  { %371 = vmatpush3.bf16.msra.mxu1 %v370_v17 }
  0x49   :  { %372 = vmatprep.subr.bf16.mxu1 %v524_v0 }
  0x4c   :  { %374 = vmatpush3.bf16.msra.mxu1 %v373_v20 }
  0x4d   :  { %375 = vmatprep.subr.bf16.mxu1 %v524_v0 }
  0x50   :  { %377 = vmatpush3.bf16.msra.mxu1 %v376_v23 }
  0x51   :  { %378 = vmatprep.subr.bf16.mxu1 %v524_v0 }
  0x54   :  { %380 = vmatpush3.bf16.msra.mxu1 %v379_v26 }
  0x55   :  { %381 = vmatprep.subr.bf16.mxu1 %v524_v0 }
  0x58   :  { %383 = vmatpush3.bf16.msra.mxu1 %v382_v29 }
 0x111   :  { %v147_v31 = vpop.f32.mrb[0].mxu0 }
 0x112   :  { %v148_v32 = vadd.f32 %v289_v30, %v147_v31  ;;  %v320_v33 = vpop.f32.mrb[1].mxu0 }
 0x114   :  { %395 = vtanh.f32 %v148_v32 }
 0x11e   :  { %v396_v34 = vpop.eup %395 }
 0x11f   :  { %257 = vst [vmem:[#allocation8] sm:$0xff] %v396_v34  ;;  %354 = vmatmul.mubr.f32.vlgmr.msra.gmra.mrb[0].mxu1 %v396_v34 }
 0x120   :  { %478 = shalt.err (!%p475_p0)
}
 0x121   :  { %s479_s2 = scalar_lea.hbm %s642_s5, 128 }
 0x122   :  { %p480_p1 = scmp.ne.s32.totalorder %s642_s5, %s479_s2  ;;  %p483_p2 = scmp.lt.u32.totalorder %s479_s2, %s642_s5 }
 0x124   :  { %p485_p3 = pnand %p483_p2, %p480_p1 }
 0x126   :  { %488 = shalt.err (!%p485_p3)
}
 0x127   :  { %268 = dma.vmem_to_hbm [thread:$0]  %s266_s11, 128, %s642_s5, [#allocation4]   ;;  %v292_v35 = vld [vmem:[%s641_s4] ss:$0 sm:$0xff]  ;;  %v245_v41 = vlaneseq }
 0x128   :  { %s529_s22 = smov [#allocation9]  }
 0x129   :  { %v246_v43 = vand.u32 127, %v245_v41  ;;  %s275_s23 = sshll.u32 %s529_s22, 4  ;;  %s276_s23 = int_to_ptr.vmem [resolvable:$true] %s275_s23 }
 0x12a   :  { %s489_s4 = scalar_lea.vmem %s276_s23, 128  ;;  %p494_p5 = scmp.lt.s32.totalorder %s276_s23, %s276_s23 }
 0x12b   :  { %vm247_vm5 = vcmp.eq.s32.totalorder %v246_v43, 3  ;;  %vm248_vm6 = vcmp.eq.s32.totalorder %v246_v43, 4  ;;  %p490_p4 = scmp.ne.s32.totalorder %s276_s23, %s489_s4  ;;  %p495_p6 = scmp.lt.s32.totalorder %s489_s4, %s489_s4 }
 0x12c   :  { %vm249_vm7 = vmor %vm247_vm5, %vm248_vm6 }
 0x12d   :  { %p496_p7 = por %p495_p6, %p494_p5 }
 0x12f   :  { %p497_p8 = pnand %p496_p7, %p490_p4 }
 0x1f2   :  { %v241_v36 = vpop.f32.mrb[0].mxu1 }
 0x1f3   :  { %v242_v37 = vadd.f32 %v292_v35, %v241_v36  ;;  %v355_v38 = vpop.f32.mrb[1].mxu1 }
 0x1f5   :  { %v293_v39 = vmul.f32 -1.442695, %v242_v37 }
 0x1f7   :  { %397 = vpow2.f32 %v293_v39 }
 0x201   :  { %v398_v40 = vpop.eup %397 }
 0x202   :  { %v253_v42 = vadd.f32 1.0, %v398_v40 }
 0x204   :  { %399 = vrcp.f32 %v253_v42 }
 0x20e   :  { %v400_v44 = vpop.eup %399 }
 0x20f   :  { %v256_v45 = vsel %vm249_vm7, %v400_v44, %v242_v37 }
 0x210   :  { %258 = vst [vmem:[#allocation9] sm:$0xff] %v256_v45 }
 0x211   :  { %500 = shalt.err (!%p497_p8)
}
 0x212   :  { %s501_s25 = scalar_lea.hbm %s643_s6, 128 }
 0x213   :  { %p502_p9 = scmp.ne.s32.totalorder %s643_s6, %s501_s25  ;;  %p505_p10 = scmp.lt.u32.totalorder %s501_s25, %s643_s6 }
 0x215   :  { %p507_p11 = pnand %p505_p10, %p502_p9 }
 0x217   :  { %510 = shalt.err (!%p507_p11)
}
 0x218   :  { %278 = dma.vmem_to_hbm [thread:$0]  %s276_s23, 128, %s643_s6, [#allocation10]  }
 0x219   :  { %515 = dma.done.wait [#allocation4], 128  }
 0x21a   :  { %516 = vsyncadd [#allocation4], 4294967168 }
 0x21b   :  { %517 = dma.done.wait [#allocation10], 128  }
 0x21c   :  { %518 = vsyncadd [#allocation10], 4294967168 }
 0x21d   :  { %285 = vsyncpa [#allocation3], 1 }
 0x21e   :  { %286 = vsyncpa [#allocation6], 1 }
 0x21f   :  { %287 = vsyncpa [#allocation4], 1 }
 0x220   :  { %288 = vsyncpa [#allocation10], 1 }

</bundles_post_ra>
